<compile_context>
chip_gen: v7x
topology: tpu7x:2x2x1
jax: 0.10.0
libtpu: 0.0.40
codegen_flags: <defaults>
</compile_context>

<pallas_src>
import jax
import jax.numpy as jnp
from jax.experimental import pallas as pl
from jax.experimental.pallas import tpu as pltpu


def _drelu_kernel(x_ref, b_ref, o_ref):
    # x_ref: (TM, TN)   b_ref: (TM, 1)   o_ref: (TM, TN)
    x = x_ref[...]
    b = b_ref[...]                      # broadcasts along the lane axis
    pos = jnp.maximum(x - b, 0)
    neg = jnp.maximum(-x - b, 0)
    o_ref[...] = (pos - neg).astype(o_ref.dtype)


def _round_up(a, b):
    return ((a + b - 1) // b) * b


def drelu(x, filters, alpha=8.0 / 255):
    """x: (N, C, H, W), filters: (C, Cin, kh, kw) -> (N, C, H, W)"""
    N, C, H, W = x.shape
    assert filters.shape[0] == C
    rows = N * C
    HW = H * W
    dtype = x.dtype

    # --- bias: computed once, outside the streaming pipeline ----------------
    # per-channel: alpha * sum(|filters|) over all non-channel dims (f32 accum)
    bias_c = (alpha * jnp.sum(jnp.abs(filters.astype(jnp.float32)),
                              axis=(1, 2, 3))).astype(dtype)        # (C,)
    bias_rows = jnp.tile(bias_c, (N,)).reshape(rows, 1)              # (N*C, 1)

    # --- tiling --------------------------------------------------------------
    sub = 16 if dtype in (jnp.bfloat16, jnp.float16) else 8
    TM = min(_round_up(rows, sub), 256)       # sublane tile (multiple of 8/16)
    TN = min(_round_up(HW, 128), 2048)        # lane-dense tile (multiple of 128)

    rows_p = _round_up(rows, TM)
    hw_p = _round_up(HW, TN)

    x_flat = x.reshape(rows, HW)
    if rows_p != rows or hw_p != HW:
        x_flat = jnp.pad(x_flat, ((0, rows_p - rows), (0, hw_p - HW)))
        bias_rows = jnp.pad(bias_rows, ((0, rows_p - rows), (0, 0)))

    grid = (rows_p // TM, hw_p // TN)

    out_flat = pl.pallas_call(
        _drelu_kernel,
        out_shape=jax.ShapeDtypeStruct((rows_p, hw_p), dtype),
        grid_spec=pltpu.PrefetchScalarGridSpec(
            num_scalar_prefetch=0,
            grid=grid,
            in_specs=[
                pl.BlockSpec((TM, TN), lambda i, j: (i, j)),   # x tile
                pl.BlockSpec((TM, 1), lambda i, j: (i, 0)),    # bias column
            ],
            out_specs=pl.BlockSpec((TM, TN), lambda i, j: (i, j)),
        ),
        compiler_params=pltpu.CompilerParams(
            dimension_semantics=("parallel", "parallel"),
            vmem_limit_bytes=32 * 1024 * 1024,
        ),
    )(x_flat, bias_rows)

    return out_flat[:rows, :HW].reshape(N, C, H, W)


def drelu_ref(x, filters, alpha=8.0 / 255):
    bias = alpha * jnp.sum(jnp.abs(filters), axis=(1, 2, 3))[None, :, None, None]
    return jnp.maximum(x - bias, 0.0) - jnp.maximum(-x - bias, 0.0)


if __name__ == "__main__":
    key = jax.random.PRNGKey(0)
    kx, kf = jax.random.split(key)

    N, C, H, W = 2, 4, 16, 16
    Cin, kh, kw = 3, 3, 3

    x = jax.random.normal(kx, (N, C, H, W), dtype=jnp.float32)
    filters = 0.1 * jax.random.normal(kf, (C, Cin, kh, kw), dtype=jnp.float32)

    out = drelu(x, filters)
    out = jax.block_until_ready(out)

    ref = drelu_ref(x, filters)
    assert out.shape == (N, C, H, W)
    assert jnp.allclose(out, ref, atol=1e-5, rtol=1e-5)

    print("KERNEL_OK")
</pallas_src>

<mosaic_0001>
module attributes {stable_mosaic.version = 11 : i64} {
  func.func @_drelu_kernel(%arg0: i32, %arg1: i32, %arg2: memref<8x256xf32, #tpu.memory_space<vmem>>, %arg3: memref<8x1xf32, #tpu.memory_space<vmem>>, %arg4: memref<8x256xf32, #tpu.memory_space<vmem>>) attributes {dimension_semantics = [#tpu.dimension_semantics<parallel>, #tpu.dimension_semantics<parallel>], iteration_bounds = array<i64: 1, 1>, scalar_prefetch = 0 : i64, scratch_operands = 0 : i64, tpu.core_type = #tpu.core_type<tc>, window_params = [{transform_indices = @transform_0, window_bounds = array<i64: 8, 256>}, {transform_indices = @transform_1, window_bounds = array<i64: 8, 1>}, {transform_indices = @transform_2, window_bounds = array<i64: 8, 256>}]} {
    %c0 = arith.constant 0 : index
    %c0_0 = arith.constant 0 : index
    %0 = vector.load %arg2[%c0, %c0_0] : memref<8x256xf32, #tpu.memory_space<vmem>>, vector<8x256xf32>
    %c0_1 = arith.constant 0 : index
    %c0_2 = arith.constant 0 : index
    %1 = vector.load %arg3[%c0_1, %c0_2] : memref<8x1xf32, #tpu.memory_space<vmem>>, vector<8x1xf32>
    %2 = vector.broadcast %1 : vector<8x1xf32> to vector<8x256xf32>
    %3 = arith.subf %0, %2 : vector<8x256xf32>
    %cst = arith.constant 0.000000e+00 : f32
    %4 = vector.broadcast %cst : f32 to vector<8x256xf32>
    %5 = arith.maximumf %3, %4 : vector<8x256xf32>
    %cst_3 = arith.constant 0.000000e+00 : f32
    %6 = vector.broadcast %cst_3 : f32 to vector<8x256xf32>
    %7 = arith.subf %6, %0 : vector<8x256xf32>
    %8 = vector.broadcast %1 : vector<8x1xf32> to vector<8x256xf32>
    %9 = arith.subf %7, %8 : vector<8x256xf32>
    %cst_4 = arith.constant 0.000000e+00 : f32
    %10 = vector.broadcast %cst_4 : f32 to vector<8x256xf32>
    %11 = arith.maximumf %9, %10 : vector<8x256xf32>
    %12 = arith.subf %5, %11 : vector<8x256xf32>
    %c0_5 = arith.constant 0 : index
    %c0_6 = arith.constant 0 : index
    %13 = vector.load %arg4[%c0_5, %c0_6] : memref<8x256xf32, #tpu.memory_space<vmem>>, vector<8x256xf32>
    tpu.vector_store %arg4[%c0_5, %c0_6], %12 {strides = array<i32>} : memref<8x256xf32, #tpu.memory_space<vmem>>, vector<8x256xf32>,
    return
  }
  func.func @transform_0(%arg0: i32, %arg1: i32) -> (i32, i32) {
    %c0_i32 = arith.constant 0 : i32
    return %arg0, %arg1 : i32, i32
  }
  func.func @transform_1(%arg0: i32, %arg1: i32) -> (i32, i32) {
    %c0_i32 = arith.constant 0 : i32
    %c0_i32_0 = arith.constant 0 : i32
    return %arg0, %c0_i32 : i32, i32
  }
  func.func @transform_2(%arg0: i32, %arg1: i32) -> (i32, i32) {
    %c0_i32 = arith.constant 0 : i32
    return %arg0, %arg1 : i32, i32
  }
}

</mosaic_0001>

<bundles_post_ra>
// kernel: tpu_custom_call.1
= control target key start
LH: loop header
LB: loop body
LE: loop exit
PB: predicated region body
PF: predicated region fallthrough
CT: control target
= control target key end

     0   :  { %7 = vsyncpa [#allocation3], 0  ;;  %s158_s0 = inlined_call_operand.hbm [shape: f32[8,256], index: 0, kind: input, shape index: {}]   ;;  %s159_s1 = inlined_call_operand.vmem [shape: f32[8,1], index: 1, kind: input, shape index: {}]   ;;  %s160_s2 = inlined_call_operand.hbm [shape: f32[8,256], index: 2, kind: output, shape index: {}]  }
   0x1   :  { %8 = vsyncpa [#allocation4], 0  ;;  %s113_s9 = smov [#allocation2]   ;;  %s65_s13 = scalar_lea.hbm %s158_s0, 256 }
   0x2   :  { %s15_s10 = sshll.u32 %s113_s9, 4  ;;  %p66_p0 = scmp.ne.s32.totalorder %s158_s0, %s65_s13  ;;  %s16_s10 = int_to_ptr.vmem [resolvable:$true] %s15_s10 }
   0x3   :  { %p69_p1 = scmp.lt.u32.totalorder %s65_s13, %s158_s0 }
   0x5   :  { %p71_p2 = pnand %p69_p1, %p66_p0 }
   0x7   :  { %74 = shalt.err (!%p71_p2)
}
   0x8   :  { %s75_s18 = scalar_lea.vmem %s16_s10, 256  ;;  %p80_p4 = scmp.lt.s32.totalorder %s16_s10, %s16_s10 }
   0x9   :  { %p76_p3 = scmp.ne.s32.totalorder %s16_s10, %s75_s18  ;;  %p81_p5 = scmp.lt.s32.totalorder %s75_s18, %s75_s18 }
   0xb   :  { %p82_p6 = por %p81_p5, %p80_p4 }
   0xd   :  { %p83_p7 = pnand %p82_p6, %p76_p3 }
   0xf   :  { %86 = shalt.err (!%p83_p7)
}
  0x10   :  { %18 = dma.hbm_to_vmem [thread:$0]  %s158_s0, 256, %s16_s10, [#allocation3]  }
  0x11   :  { %109 = dma.done.wait [#allocation3], 256  }
  0x12   :  { %110 = vsyncadd [#allocation3], 4294967040  ;;  %v114_v0 = vmov 0   ;;  %v26_v1 = vld [vmem:[%s159_s1] sm:$0xff]  ;;  %v25_v3 = vld [vmem:[#allocation2 + $0x8] sm:$0xff]  ;;  %s115_s23 = smov [#allocation5]  }
  0x13   :  { %64 = vset.pattern.permute.xlu0 %v114_v0  ;;  %v24_v2 = vld [vmem:[#allocation2] sm:$0xff]  ;;  %v37_v5 = vsub.f32 0.0, %v25_v3  ;;  %s52_s0 = sshll.u32 %s115_s23, 4  ;;  %s53_s0 = int_to_ptr.vmem [resolvable:$true] %s52_s0 }
  0x14   :  { %29 = vperm.xlu0 %64, %v26_v1   ;;  %v36_v4 = vsub.f32 0.0, %v24_v2  ;;  %s87_s1 = scalar_lea.vmem %s53_s0, 256  ;;  %p92_p9 = scmp.lt.s32.totalorder %s53_s0, %s53_s0 }
  0x15   :  { %p88_p8 = scmp.ne.s32.totalorder %s53_s0, %s87_s1  ;;  %p93_p10 = scmp.lt.s32.totalorder %s87_s1, %s87_s1 }
  0x17   :  { %p94_p11 = por %p93_p10, %p92_p9 }
  0x19   :  { %p95_p12 = pnand %p94_p11, %p88_p8 }
  0x93   :  { %v30_v6 = vpop.permute.xlu0 %29 }
  0x94   :  { %v32_v7 = vsub.f32 %v24_v2, %v30_v6  ;;  %v33_v8 = vsub.f32 %v25_v3, %v30_v6  ;;  %v38_v9 = vsub.f32 %v36_v4, %v30_v6  ;;  %v39_v10 = vsub.f32 %v37_v5, %v30_v6 }
  0x96   :  { %v34_v11 = vmax.f32 %v32_v7, 0.0  ;;  %v35_v12 = vmax.f32 %v33_v8, 0.0  ;;  %v40_v13 = vmax.f32 %v38_v9, 0.0  ;;  %v41_v14 = vmax.f32 %v39_v10, 0.0 }
  0x98   :  { %v42_v15 = vsub.f32 %v34_v11, %v40_v13  ;;  %v43_v16 = vsub.f32 %v35_v12, %v41_v14 }
  0x9a   :  { %44 = vst [vmem:[#allocation5] sm:$0xff] %v42_v15  ;;  %45 = vst [vmem:[#allocation5 + $0x8] sm:$0xff] %v43_v16 }
  0x9b   :  { %98 = shalt.err (!%p95_p12)
}
  0x9c   :  { %s99_s26 = scalar_lea.hbm %s160_s2, 256 }
  0x9d   :  { %p100_p13 = scmp.ne.s32.totalorder %s160_s2, %s99_s26  ;;  %p103_p0 = scmp.lt.u32.totalorder %s99_s26, %s160_s2 }
  0x9f   :  { %p105_p1 = pnand %p103_p0, %p100_p13 }
  0xa1   :  { %108 = shalt.err (!%p105_p1)
}
  0xa2   :  { %55 = dma.vmem_to_hbm [thread:$0]  %s53_s0, 256, %s160_s2, [#allocation4]  }
  0xa3   :  { %111 = dma.done.wait [#allocation4], 256  }
  0xa4   :  { %112 = vsyncadd [#allocation4], 4294967040 }
  0xa5   :  { %59 = vsyncpa [#allocation3], 1 }
  0xa6   :  { %60 = vsyncpa [#allocation4], 1 }

</bundles_post_ra>
